<compile_context>
chip_gen: v6e
topology: v6e:2x2x1
jax: 0.10.0
libtpu: 0.0.40
codegen_flags: <defaults>
</compile_context>

<pallas_src>
import functools
import math

import jax
import jax.numpy as jnp
from jax import lax
from jax.experimental import pallas as pl
from jax.experimental.pallas import tpu as pltpu


# ---------------- node attention-mix kernel (tiled over N) ----------------
def _node_mix_kernel(meta_ref, text_ref, gate_ref, wm_ref, bm_ref, wt_ref,
                     bt_ref, o_ref):
    meta = meta_ref[...]                                              # (TN, H)
    text = text_ref[...]                                              # (TN, H)
    # TODO(synk): the two 1-lane-wide logit dots act on different inputs, so
    # merging them into one dot would require a (TN, 2H) lane concat that costs
    # more than the dot it saves; keep two narrow MXU dots.
    lm = jnp.dot(meta, wm_ref[...], preferred_element_type=jnp.float32) + bm_ref[...]
    lt = jnp.dot(text, wt_ref[...], preferred_element_type=jnp.float32) + bt_ref[...]
    mx = jnp.maximum(lm, lt)
    em = jnp.exp(lm - mx)
    et = jnp.exp(lt - mx)
    inv = pl.reciprocal(em + et, approx=True)
    o_ref[...] = (meta * (em * inv) + text * (et * inv)) * gate_ref[...]


def _pick_node_tile(N):
    if N <= 512 or N % 8 != 0:
        return N                                   # single full-dim block
    for tn in (512, 256, 128, 64, 32, 16, 8):
        if N % tn == 0:
            return tn
    return N


def node_mix(meta_vec, text_vec, gate, wm, bm, wt, bt):
    N, H = meta_vec.shape
    TN = _pick_node_tile(N)
    return pl.pallas_call(
        _node_mix_kernel,
        out_shape=jax.ShapeDtypeStruct((N, H), jnp.float32),
        grid=(N // TN,),
        in_specs=[pl.BlockSpec((TN, H), lambda i: (i, 0)),
                  pl.BlockSpec((TN, H), lambda i: (i, 0)),
                  pl.BlockSpec((TN, 1), lambda i: (i, 0)),
                  pl.BlockSpec((H, 1), lambda i: (0, 0)),
                  pl.BlockSpec((1, 1), lambda i: (0, 0)),
                  pl.BlockSpec((H, 1), lambda i: (0, 0)),
                  pl.BlockSpec((1, 1), lambda i: (0, 0))],
        out_specs=pl.BlockSpec((TN, H), lambda i: (i, 0)),
        compiler_params=pltpu.CompilerParams(dimension_semantics=("parallel",)),
    )(meta_vec, text_vec, gate.reshape(N, 1), wm, bm, wt, bt)


# ---------------- fused BERT encoder (3 layers) + f_dense kernel ----------------
def _layer_norm(v, g, b, eps=1e-12):
    mu = jnp.mean(v, axis=-1, keepdims=True)
    var = jnp.mean((v - mu) ** 2, axis=-1, keepdims=True)
    return (v - mu) * lax.rsqrt(var + eps) * g + b


def _gelu(x):
    # HF BERT "gelu" = exact erf-based gelu
    return 0.5 * x * (1.0 + lax.erf(x * (1.0 / math.sqrt(2.0))))


def _fused_encoder_kernel(num_heads, x_ref, mask_ref,
                          wqkv_ref, bqkv_ref, wo_ref, bo_ref,
                          ln1g_ref, ln1b_ref, wi_ref, bi_ref,
                          wo2_ref, bo2_ref, ln2g_ref, ln2b_ref,
                          wf_ref, o_ref):
    TB, S, H = x_ref.shape
    nh = num_heads
    dh = H // nh
    L = wqkv_ref.shape[0]

    x = x_ref[...].reshape(TB * S, H)                                 # f32 tokens
    # Hoisted mask broadcast (JAX does not CSE broadcast_in_dim): one broadcast
    # reused by every layer/head instead of L*nh implicit ones.
    maskb = jnp.broadcast_to(mask_ref[...], (TB, S, S))               # (TB, S, S)

    for l in range(L):                                                # weights stay VMEM-resident
        xb = x.astype(jnp.bfloat16)
        # fused QKV projection; 1/sqrt(dh) already folded into the Q columns/bias
        qkv = jnp.dot(xb, wqkv_ref[l],
                      preferred_element_type=jnp.float32) + bqkv_ref[l]   # (TB*S, 3H)
        qkvb = qkv.astype(jnp.bfloat16).reshape(TB, S, 3 * H)
        wo_l = wo_ref[l]                                              # (H, H) bf16

        attn = None
        for h in range(nh):                                           # unrolled; no concats
            qh = qkvb[:, :, h * dh:(h + 1) * dh]                      # (TB, S, dh)
            kh = qkvb[:, :, H + h * dh:H + (h + 1) * dh]
            vh = qkvb[:, :, 2 * H + h * dh:2 * H + (h + 1) * dh]
            # scores: single batch dim (TB), no explicit k.T
            s = lax.dot_general(qh, kh, (((2,), (2,)), ((0,), (0,))),
                                preferred_element_type=jnp.float32)       # (TB, S, S)
            s = s + maskb
            s = s - jnp.max(s, axis=-1, keepdims=True)
            p = jnp.exp(s)
            p = p * pl.reciprocal(jnp.sum(p, axis=-1, keepdims=True), approx=True)
            ctx = lax.dot_general(p.astype(jnp.bfloat16), vh,
                                  (((2,), (1,)), ((0,), (0,))),
                                  preferred_element_type=jnp.float32)     # (TB, S, dh)
            # Accumulate this head's contribution directly against its (dh, H)
            # row-slice of Wo — replaces the old lane-wise ctx head-merge.
            part = jnp.dot(ctx.reshape(TB * S, dh).astype(jnp.bfloat16),
                           wo_l[h * dh:(h + 1) * dh, :],
                           preferred_element_type=jnp.float32)            # (TB*S, H)
            attn = part if attn is None else attn + part
        # TODO(synk): if MXU depth becomes binding at real sizes (nh=12, K=64
        # per-head dots), re-evaluate a single head-merge relayout that restores
        # one K=H contraction; decide from the bundle, not by guess.
        attn_out = attn + bo_ref[l]
        h1 = _layer_norm(attn_out + x, ln1g_ref[l], ln1b_ref[l])
        inter = _gelu(jnp.dot(h1.astype(jnp.bfloat16), wi_ref[l],
                              preferred_element_type=jnp.float32) + bi_ref[l])
        ffn = jnp.dot(inter.astype(jnp.bfloat16), wo2_ref[l],
                      preferred_element_type=jnp.float32) + bo2_ref[l]
        x = _layer_norm(ffn + h1, ln2g_ref[l], ln2b_ref[l])

    # f_dense fused in-kernel on the CLS (position 0) tokens; 768 = 6x128 lanes
    graph = x.reshape(TB, S, H)[:, 0, :]                              # (TB, H)
    o_ref[...] = jnp.dot(graph.astype(jnp.bfloat16), wf_ref[...],
                         preferred_element_type=jnp.float32)          # (TB, 768)


_ENC_NAMES = ('wqkv', 'bqkv', 'wo', 'bo', 'ln1g', 'ln1b',
              'wi', 'bi', 'wo2', 'bo2', 'ln2g', 'ln2b')


def _full_spec(arr):
    nd = arr.ndim
    return pl.BlockSpec(arr.shape, lambda b, _nd=nd: (0,) * _nd)


def _pick_batch_tile(B, S, target_rows=512):
    """Batch rows per grid step: ~512 flattened tokens per step (feeds the
    256-wide v6e/v7x MXU, amortizes ~0.35us/step overhead), TB a multiple of 8
    (sublane / bf16 packing + legal (TB, 768) output blocks), and >= 2 grid
    steps when B allows it so both v7x TensorCores get work."""
    if B < 16:
        return B                       # too small to split; single full block
    tb = max(8, (target_rows // max(S, 1)) // 8 * 8)
    tb = min(tb, max(8, (B // 2) // 8 * 8))
    return tb


def graph_bert_encode(x, ext_mask, enc, f_dense_w_t, num_heads, batch_tile=None):
    B, S, H = x.shape
    assert H % num_heads == 0
    TB = batch_tile if batch_tile is not None else _pick_batch_tile(B, S)
    n_steps = pl.cdiv(B, TB)
    Bp = n_steps * TB
    if Bp != B:
        # cdiv grid with a zero-padded/masked batch tail (keeps the pipeline
        # depth for awkward B instead of loading the whole batch in one step)
        x = jnp.concatenate([x, jnp.zeros((Bp - B, S, H), x.dtype)], axis=0)
        ext_mask = jnp.concatenate(
            [ext_mask, jnp.full((Bp - B, 1, S), -10000.0, ext_mask.dtype)], axis=0)
    weights = [enc[n] for n in _ENC_NAMES] + [f_dense_w_t]
    out_dim = f_dense_w_t.shape[1]
    out = pl.pallas_call(
        functools.partial(_fused_encoder_kernel, num_heads),
        out_shape=jax.ShapeDtypeStruct((Bp, out_dim), jnp.float32),
        grid=(n_steps,),
        in_specs=[pl.BlockSpec((TB, S, H), lambda b: (b, 0, 0)),
                  pl.BlockSpec((TB, 1, S), lambda b: (b, 0, 0))]
                 + [_full_spec(w) for w in weights],
        out_specs=pl.BlockSpec((TB, out_dim), lambda b: (b, 0)),
        compiler_params=pltpu.CompilerParams(
            dimension_semantics=("parallel",),
            # > v5e's 16 MiB scoped default; toy weight stack is < 1 MiB.
            # TODO(synk): real BERT sizes: raise to ~100 MiB on v5e/v6e
            # (weight-resident ~43 MB) and layer-stream on v7x (64 MiB VMEM).
            vmem_limit_bytes=32 * 1024 * 1024),
    )(x, ext_mask, *weights)
    return out[:B]


# ---------------- parameter init (deterministic, synthetic) ----------------
def init_params(key, vocab, hidden, num_layers, num_heads, intermediate, out_dim):
    keys = jax.random.split(key, 4 + num_layers)
    # meta embedding table + appended zero pad row (matches torch.concat)
    embed = jax.random.normal(keys[0], (vocab, hidden), jnp.float32)
    embed = jnp.concatenate([embed, jnp.zeros((1, hidden), jnp.float32)], axis=0)
    params = {
        'meta_embed': embed,
        # nn.Linear(H, 1): weight ~ N(0, 1), bias = 0 (init_weights); stored (H, 1)
        'meta_w': jax.random.normal(keys[1], (hidden, 1), jnp.float32),
        'meta_b': jnp.zeros((1, 1), jnp.float32),
        'text_w': jax.random.normal(keys[2], (hidden, 1), jnp.float32),
        'text_b': jnp.zeros((1, 1), jnp.float32),
        # nn.Linear(H, 768, bias=False): weight ~ N(0, 1); stored (H, 768) bf16
        'f_dense_w_t': jax.random.normal(keys[3], (out_dim, hidden),
                                         jnp.float32).T.astype(jnp.bfloat16),
    }
    std = 0.02  # BERT-style init for the synthetic encoder weights
    dh = hidden // num_heads
    scale = 1.0 / math.sqrt(dh)

    stacks = {n: [] for n in _ENC_NAMES}
    for li in range(num_layers):
        lk = jax.random.split(keys[4 + li], 6)

        def lin(k, fi, fo):
            return jax.random.normal(k, (fi, fo), jnp.float32) * std

        # Fold 1/sqrt(dh) into BOTH Wq and bq. bq is zero for this synthetic
        # init, but a real BERT checkpoint has a nonzero query bias that MUST
        # be scaled here as well.
        wq = lin(lk[0], hidden, hidden) * scale
        bq = jnp.zeros((hidden,), jnp.float32) * scale
        wk = lin(lk[1], hidden, hidden)
        wv = lin(lk[2], hidden, hidden)
        stacks['wqkv'].append(jnp.concatenate([wq, wk, wv], axis=1))       # (H, 3H)
        stacks['bqkv'].append(jnp.concatenate(
            [bq, jnp.zeros((hidden,), jnp.float32),
             jnp.zeros((hidden,), jnp.float32)])[None, :])                 # (1, 3H)
        stacks['wo'].append(lin(lk[3], hidden, hidden))
        stacks['bo'].append(jnp.zeros((1, hidden), jnp.float32))
        stacks['ln1g'].append(jnp.ones((1, hidden), jnp.float32))
        stacks['ln1b'].append(jnp.zeros((1, hidden), jnp.float32))
        stacks['wi'].append(lin(lk[4], hidden, intermediate))
        stacks['bi'].append(jnp.zeros((1, intermediate), jnp.float32))
        stacks['wo2'].append(lin(lk[5], intermediate, hidden))
        stacks['bo2'].append(jnp.zeros((1, hidden), jnp.float32))
        stacks['ln2g'].append(jnp.ones((1, hidden), jnp.float32))
        stacks['ln2b'].append(jnp.zeros((1, hidden), jnp.float32))

    matmul_weights = ('wqkv', 'wo', 'wi', 'wo2')
    enc = {}
    for n in _ENC_NAMES:
        w = jnp.stack(stacks[n], axis=0)                 # leading L axis
        enc[n] = w.astype(jnp.bfloat16) if n in matmul_weights else w
    params['enc'] = enc
    return params


# ---------------- forward (matches GraphEncoder.forward) ----------------
def graph_encoder_forward(params, all_subgraph, node_text_vec, node_type_ids,
                          node_gate, num_heads):
    N, H = node_text_vec.shape
    # meta embedding lookup (glue gather)
    meta_vec = params['meta_embed'][node_type_ids]                     # (N, H)
    # attention mix of meta/text vectors + gating  (Pallas, tiled over N)
    node_emb = node_mix(meta_vec, node_text_vec, node_gate,
                        params['meta_w'], params['meta_b'],
                        params['text_w'], params['text_b'])            # (N, H)
    # pad index == N (== node_embeddings.shape[0] before concat)
    mask_ids = (all_subgraph != N).astype(jnp.float32)                 # (B, S)
    ext_mask = ((1.0 - mask_ids) * -10000.0)[:, None, :]               # (B, 1, S)
    node_emb_pad = jnp.concatenate(
        [node_emb, jnp.zeros((1, H), jnp.float32)], axis=0)            # (N+1, H)
    x = node_emb_pad[all_subgraph]                                     # (B, S, H) glue gather
    # fused: last-3 BERT encoder layers + f_dense on CLS (single Pallas kernel)
    return graph_bert_encode(x, ext_mask, params['enc'],
                             params['f_dense_w_t'], num_heads)         # (B, 768)


if __name__ == "__main__":
    B, S = 2, 8            # subgraphs, tokens per subgraph
    N, V = 16, 10          # nodes, meta-type vocab
    H = 128                # hidden_size
    NUM_LAYERS, NUM_HEADS, INTERMEDIATE, OUT_DIM = 3, 2, 256, 768

    key = jax.random.PRNGKey(0)
    kp, k1, k2, k3, k4 = jax.random.split(key, 5)
    params = init_params(kp, V, H, NUM_LAYERS, NUM_HEADS, INTERMEDIATE, OUT_DIM)

    node_text_vec = jax.random.normal(k1, (N, H), jnp.float32)
    node_type_ids = jax.random.randint(k2, (N,), 0, V)
    node_gate = jax.random.uniform(k3, (N,), jnp.float32)
    # token ids in [0, N]; id == N is the pad node
    all_subgraph = jax.random.randint(k4, (B, S), 0, N + 1)
    all_subgraph = all_subgraph.at[:, 0].set(0)   # first token is a real node

    out = graph_encoder_forward(params, all_subgraph, node_text_vec,
                                node_type_ids, node_gate, NUM_HEADS)
    jax.block_until_ready(out)
    assert out.shape == (B, OUT_DIM) and out.dtype == jnp.float32
    assert bool(jnp.all(jnp.isfinite(out)))
    print("KERNEL_OK")
</pallas_src>

<mosaic_0001>
module attributes {stable_mosaic.version = 11 : i64} {
  func.func @_node_mix_kernel(%arg0: i32, %arg1: memref<16x128xf32, #tpu.memory_space<vmem>>, %arg2: memref<16x128xf32, #tpu.memory_space<vmem>>, %arg3: memref<16x1xf32, #tpu.memory_space<vmem>>, %arg4: memref<128x1xf32, #tpu.memory_space<vmem>>, %arg5: memref<1x1xf32, #tpu.memory_space<vmem>>, %arg6: memref<128x1xf32, #tpu.memory_space<vmem>>, %arg7: memref<1x1xf32, #tpu.memory_space<vmem>>, %arg8: memref<16x128xf32, #tpu.memory_space<vmem>>) attributes {dimension_semantics = [#tpu.dimension_semantics<parallel>], iteration_bounds = array<i64: 1>, scalar_prefetch = 0 : i64, scratch_operands = 0 : i64, tpu.core_type = #tpu.core_type<tc>, window_params = [{transform_indices = @transform_0, window_bounds = array<i64: 16, 128>}, {transform_indices = @transform_1, window_bounds = array<i64: 16, 128>}, {transform_indices = @transform_2, window_bounds = array<i64: 16, 1>}, {pipeline_mode = #tpu.pipeline_mode<synchronous>, transform_indices = @transform_3, window_bounds = array<i64: 128, 1>}, {pipeline_mode = #tpu.pipeline_mode<synchronous>, transform_indices = @transform_4, window_bounds = array<i64: 1, 1>}, {pipeline_mode = #tpu.pipeline_mode<synchronous>, transform_indices = @transform_5, window_bounds = array<i64: 128, 1>}, {pipeline_mode = #tpu.pipeline_mode<synchronous>, transform_indices = @transform_6, window_bounds = array<i64: 1, 1>}, {transform_indices = @transform_7, window_bounds = array<i64: 16, 128>}]} {
    %c0 = arith.constant 0 : index
    %c0_0 = arith.constant 0 : index
    %0 = vector.load %arg1[%c0, %c0_0] : memref<16x128xf32, #tpu.memory_space<vmem>>, vector<16x128xf32>
    %c0_1 = arith.constant 0 : index
    %c0_2 = arith.constant 0 : index
    %1 = vector.load %arg2[%c0_1, %c0_2] : memref<16x128xf32, #tpu.memory_space<vmem>>, vector<16x128xf32>
    %c0_3 = arith.constant 0 : index
    %c0_4 = arith.constant 0 : index
    %2 = vector.load %arg4[%c0_3, %c0_4] : memref<128x1xf32, #tpu.memory_space<vmem>>, vector<128x1xf32>
    %cst = arith.constant dense<0.000000e+00> : vector<16x1xf32>
    %3 = tpu.matmul %0, %2, %cst {dimension_numbers = #tpu.dot_dimension_numbers<[1], [0], [0], [1], [0, 0, 1, 1], [], []>} : vector<16x128xf32>, vector<128x1xf32>, vector<16x1xf32> -> vector<16x1xf32>
    %c0_5 = arith.constant 0 : index
    %c0_6 = arith.constant 0 : index
    %4 = vector.load %arg5[%c0_5, %c0_6] : memref<1x1xf32, #tpu.memory_space<vmem>>, vector<1x1xf32>
    %5 = vector.broadcast %4 : vector<1x1xf32> to vector<16x1xf32>
    %6 = arith.addf %3, %5 : vector<16x1xf32>
    %c0_7 = arith.constant 0 : index
    %c0_8 = arith.constant 0 : index
    %7 = vector.load %arg6[%c0_7, %c0_8] : memref<128x1xf32, #tpu.memory_space<vmem>>, vector<128x1xf32>
    %cst_9 = arith.constant dense<0.000000e+00> : vector<16x1xf32>
    %8 = tpu.matmul %1, %7, %cst_9 {dimension_numbers = #tpu.dot_dimension_numbers<[1], [0], [0], [1], [0, 0, 1, 1], [], []>} : vector<16x128xf32>, vector<128x1xf32>, vector<16x1xf32> -> vector<16x1xf32>
    %c0_10 = arith.constant 0 : index
    %c0_11 = arith.constant 0 : index
    %9 = vector.load %arg7[%c0_10, %c0_11] : memref<1x1xf32, #tpu.memory_space<vmem>>, vector<1x1xf32>
    %10 = vector.broadcast %9 : vector<1x1xf32> to vector<16x1xf32>
    %11 = arith.addf %8, %10 : vector<16x1xf32>
    %12 = arith.maximumf %6, %11 : vector<16x1xf32>
    %13 = arith.subf %6, %12 : vector<16x1xf32>
    %14 = math.exp %13 : vector<16x1xf32>
    %15 = arith.subf %11, %12 : vector<16x1xf32>
    %16 = math.exp %15 : vector<16x1xf32>
    %17 = arith.addf %14, %16 : vector<16x1xf32>
    %18 = tpu.reciprocal %17 {approx = true} : vector<16x1xf32> -> vector<16x1xf32>
    %19 = arith.mulf %14, %18 : vector<16x1xf32>
    %20 = vector.broadcast %19 : vector<16x1xf32> to vector<16x128xf32>
    %21 = arith.mulf %0, %20 : vector<16x128xf32>
    %22 = arith.mulf %16, %18 : vector<16x1xf32>
    %23 = vector.broadcast %22 : vector<16x1xf32> to vector<16x128xf32>
    %24 = arith.mulf %1, %23 : vector<16x128xf32>
    %25 = arith.addf %21, %24 : vector<16x128xf32>
    %c0_12 = arith.constant 0 : index
    %c0_13 = arith.constant 0 : index
    %26 = vector.load %arg3[%c0_12, %c0_13] : memref<16x1xf32, #tpu.memory_space<vmem>>, vector<16x1xf32>
    %27 = vector.broadcast %26 : vector<16x1xf32> to vector<16x128xf32>
    %28 = arith.mulf %25, %27 : vector<16x128xf32>
    %c0_14 = arith.constant 0 : index
    %c0_15 = arith.constant 0 : index
    %29 = vector.load %arg8[%c0_14, %c0_15] : memref<16x128xf32, #tpu.memory_space<vmem>>, vector<16x128xf32>
    tpu.vector_store %arg8[%c0_14, %c0_15], %28 {strides = array<i32>} : memref<16x128xf32, #tpu.memory_space<vmem>>, vector<16x128xf32>,
    return
  }
  func.func @transform_0(%arg0: i32) -> (i32, i32) {
    %c0_i32 = arith.constant 0 : i32
    %c0_i32_0 = arith.constant 0 : i32
    return %arg0, %c0_i32 : i32, i32
  }
  func.func @transform_1(%arg0: i32) -> (i32, i32) {
    %c0_i32 = arith.constant 0 : i32
    %c0_i32_0 = arith.constant 0 : i32
    return %arg0, %c0_i32 : i32, i32
  }
  func.func @transform_2(%arg0: i32) -> (i32, i32) {
    %c0_i32 = arith.constant 0 : i32
    %c0_i32_0 = arith.constant 0 : i32
    return %arg0, %c0_i32 : i32, i32
  }
  func.func @transform_3(%arg0: i32) -> (i32, i32) {
    %c0_i32 = arith.constant 0 : i32
    %c0_i32_0 = arith.constant 0 : i32
    %c0_i32_1 = arith.constant 0 : i32
    return %c0_i32, %c0_i32_0 : i32, i32
  }
  func.func @transform_4(%arg0: i32) -> (i32, i32) {
    %c0_i32 = arith.constant 0 : i32
    %c0_i32_0 = arith.constant 0 : i32
    %c0_i32_1 = arith.constant 0 : i32
    return %c0_i32, %c0_i32_0 : i32, i32
  }
  func.func @transform_5(%arg0: i32) -> (i32, i32) {
    %c0_i32 = arith.constant 0 : i32
    %c0_i32_0 = arith.constant 0 : i32
    %c0_i32_1 = arith.constant 0 : i32
    return %c0_i32, %c0_i32_0 : i32, i32
  }
  func.func @transform_6(%arg0: i32) -> (i32, i32) {
    %c0_i32 = arith.constant 0 : i32
    %c0_i32_0 = arith.constant 0 : i32
    %c0_i32_1 = arith.constant 0 : i32
    return %c0_i32, %c0_i32_0 : i32, i32
  }
  func.func @transform_7(%arg0: i32) -> (i32, i32) {
    %c0_i32 = arith.constant 0 : i32
    %c0_i32_0 = arith.constant 0 : i32
    return %arg0, %c0_i32 : i32, i32
  }
}

</mosaic_0001>

<bundles_post_ra>
// kernel: tpu_custom_call.1
= control target key start
LH: loop header
LB: loop body
LE: loop exit
PB: predicated region body
PF: predicated region fallthrough
CT: control target
= control target key end

     0   :  { %s634_s0 = inlined_call_operand.vmem [shape: f32[16,128], index: 0, kind: input, shape index: {}]   ;;  %s635_s1 = inlined_call_operand.vmem [shape: f32[16,128], index: 1, kind: input, shape index: {}]   ;;  %s636_s2 = inlined_call_operand.vmem [shape: f32[16,1], index: 2, kind: input, shape index: {}]   ;;  %s637_s3 = inlined_call_operand.vmem [shape: f32[128,1], index: 3, kind: input, shape index: {}]   ;;  %s638_s4 = inlined_call_operand.<no memory space> [shape: f32[1,1], index: 4, kind: input, shape index: {}]   ;;  %s639_s5 = inlined_call_operand.vmem [shape: f32[128,1], index: 5, kind: input, shape index: {}]   ;;  %s640_s7 = inlined_call_operand.hbm [shape: f32[16,128], index: 7, kind: output, shape index: {}]   ;;  %s641_s6 = inlined_call_operand.<no memory space> [shape: f32[1,1], index: 6, kind: input, shape index: {}]  }
   0x1   :  { %v12_v0 = vstv %s638_s4  ;;  %v14_v1 = vstv %s641_s6 }
   0x2   :  { %13 = vst [vmem:[#allocation2] sm:$0x1] %v12_v0  ;;  %15 = vst [vmem:[#allocation3] sm:$0x1] %v14_v1 }
   0x3   :  { %v50_v2 = vld [vmem:[%s637_s3 + $0x78] sm:$0xff]  ;;  %v49_v4 = vld [vmem:[%s637_s3 + $0x70] sm:$0xff]  ;;  %v48_v6 = vld [vmem:[%s637_s3 + $0x68] sm:$0xff] }
   0x4   :  { %v148_v3 = vld [vmem:[%s639_s5 + $0x78] sm:$0xff]  ;;  %349 = vmatprep.subr.mxu0 %v50_v2  ;;  %v147_v5 = vld [vmem:[%s639_s5 + $0x70] sm:$0xff]  ;;  %v146_v7 = vld [vmem:[%s639_s5 + $0x68] sm:$0xff] }
   0x5   :  { %384 = vmatprep.subr.mxu1 %v148_v3  ;;  %350 = vmatpush3.msra.mxu0 %v50_v2  ;;  %v47_v8 = vld [vmem:[%s637_s3 + $0x60] sm:$0xff]  ;;  %v46_v10 = vld [vmem:[%s637_s3 + $0x58] sm:$0xff]  ;;  %v45_v12 = vld [vmem:[%s637_s3 + $0x50] sm:$0xff] }
   0x6   :  { %385 = vmatpush3.msra.mxu1 %v148_v3  ;;  %351 = vmatprep.subr.mxu0 %v49_v4  ;;  %v145_v9 = vld [vmem:[%s639_s5 + $0x60] sm:$0xff]  ;;  %v144_v11 = vld [vmem:[%s639_s5 + $0x58] sm:$0xff]  ;;  %v143_v13 = vld [vmem:[%s639_s5 + $0x50] sm:$0xff] }
   0x7   :  { %386 = vmatprep.subr.mxu1 %v147_v5  ;;  %352 = vmatpush3.msra.mxu0 %v49_v4  ;;  %v44_v14 = vld [vmem:[%s637_s3 + $0x48] sm:$0xff]  ;;  %v43_v16 = vld [vmem:[%s637_s3 + $0x40] sm:$0xff] }
   0x8   :  { %387 = vmatpush3.msra.mxu1 %v147_v5  ;;  %353 = vmatprep.subr.mxu0 %v48_v6  ;;  %v142_v15 = vld [vmem:[%s639_s5 + $0x48] sm:$0xff]  ;;  %v141_v17 = vld [vmem:[%s639_s5 + $0x40] sm:$0xff] }
   0x9   :  { %388 = vmatprep.subr.mxu1 %v146_v7  ;;  %354 = vmatpush3.msra.mxu0 %v48_v6 }
   0xa   :  { %389 = vmatpush3.msra.mxu1 %v146_v7  ;;  %355 = vmatprep.subr.mxu0 %v47_v8 }
   0xb   :  { %390 = vmatprep.subr.mxu1 %v145_v9  ;;  %356 = vmatpush3.msra.mxu0 %v47_v8 }
   0xc   :  { %391 = vmatpush3.msra.mxu1 %v145_v9  ;;  %357 = vmatprep.subr.mxu0 %v46_v10 }
   0xd   :  { %392 = vmatprep.subr.mxu1 %v144_v11  ;;  %358 = vmatpush3.msra.mxu0 %v46_v10 }
   0xe   :  { %393 = vmatpush3.msra.mxu1 %v144_v11  ;;  %359 = vmatprep.subr.mxu0 %v45_v12 }
   0xf   :  { %394 = vmatprep.subr.mxu1 %v143_v13  ;;  %360 = vmatpush3.msra.mxu0 %v45_v12 }
  0x10   :  { %395 = vmatpush3.msra.mxu1 %v143_v13 }
  0x11   :  { %16 = vsyncpa [#allocation5], 0  ;;  %361 = vmatprep.subr.mxu0 %v44_v14  ;;  %396 = vmatprep.subr.mxu1 %v142_v15  ;;  %v42_v18 = vld [vmem:[%s637_s3 + $0x38] sm:$0xff]  ;;  %v41_v20 = vld [vmem:[%s637_s3 + $0x30] sm:$0xff]  ;;  %v459_v38 = vmov 0   ;;  %s460_s25 = smov [#allocation4]  }
  0x12   :  { %362 = vmatpush3.msra.mxu0 %v44_v14  ;;  %397 = vmatpush3.msra.mxu1 %v142_v15  ;;  %v140_v19 = vld [vmem:[%s639_s5 + $0x38] sm:$0xff]  ;;  %v139_v21 = vld [vmem:[%s639_s5 + $0x30] sm:$0xff]  ;;  %v40_v22 = vld [vmem:[%s637_s3 + $0x28] sm:$0xff]  ;;  %s300_s26 = sshll.u32 %s460_s25, 4  ;;  %s301_s26 = int_to_ptr.vmem [resolvable:$true] %s300_s26 }
  0x13   :  { %363 = vmatprep.subr.mxu0 %v43_v16  ;;  %398 = vmatprep.subr.mxu1 %v141_v17  ;;  %v138_v23 = vld [vmem:[%s639_s5 + $0x28] sm:$0xff]  ;;  %v39_v24 = vld [vmem:[%s637_s3 + $0x20] sm:$0xff]  ;;  %v38_v26 = vld [vmem:[%s637_s3 + $0x18] sm:$0xff]  ;;  %p442_p1 = scmp.lt.s32.totalorder %s301_s26, %s301_s26 }
  0x14   :  { %364 = vmatpush3.msra.mxu0 %v43_v16  ;;  %399 = vmatpush3.msra.mxu1 %v141_v17  ;;  %v137_v25 = vld [vmem:[%s639_s5 + $0x20] sm:$0xff]  ;;  %v136_v27 = vld [vmem:[%s639_s5 + $0x18] sm:$0xff]  ;;  %v37_v28 = vld [vmem:[%s637_s3 + $0x10] sm:$0xff] }
  0x15   :  { %365 = vmatprep.subr.mxu0 %v42_v18  ;;  %400 = vmatprep.subr.mxu1 %v140_v19  ;;  %v135_v29 = vld [vmem:[%s639_s5 + $0x10] sm:$0xff]  ;;  %v36_v30 = vld [vmem:[%s637_s3 + $0x8] sm:$0xff]  ;;  %v35_v32 = vld [vmem:[%s637_s3] sm:$0xff] }
  0x16   :  { %366 = vmatpush3.msra.mxu0 %v42_v18  ;;  %401 = vmatpush3.msra.mxu1 %v140_v19  ;;  %v134_v31 = vld [vmem:[%s639_s5 + $0x8] sm:$0xff]  ;;  %v133_v33 = vld [vmem:[%s639_s5] sm:$0xff] }
  0x17   :  { %367 = vmatprep.subr.mxu0 %v41_v20  ;;  %402 = vmatprep.subr.mxu1 %v139_v21  ;;  %v608_v34 = vld [vmem:[%s634_s0] sm:$0xff]  ;;  %v32_v36 = vld [vmem:[%s634_s0 + $0x8] sm:$0xff] }
  0x18   :  { %368 = vmatpush3.msra.mxu0 %v41_v20  ;;  %403 = vmatpush3.msra.mxu1 %v139_v21  ;;  %v613_v35 = vld [vmem:[%s635_s1] sm:$0xff]  ;;  %v34_v37 = vld [vmem:[%s635_s1 + $0x8] sm:$0xff] }
  0x19   :  { %369 = vmatprep.subr.mxu0 %v40_v22  ;;  %404 = vmatprep.subr.mxu1 %v138_v23  ;;  %v311_v39 = vld [vmem:[#allocation2] ss:$0 sm:$0xff]  ;;  %v312_v40 = vld [vmem:[#allocation3] ss:$0 sm:$0xff]  ;;  %v280_v7 = vld [vmem:[%s636_s2 + $0x8] sm:$0xff] }
  0x1a   :  { %370 = vmatpush3.msra.mxu0 %v40_v22  ;;  %405 = vmatpush3.msra.mxu1 %v138_v23  ;;  %v279_v8 = vld [vmem:[%s636_s2] sm:$0xff]  ;;  %s437_s2 = scalar_lea.vmem %s301_s26, 256 }
  0x1b   :  { %371 = vmatprep.subr.mxu0 %v39_v24  ;;  %406 = vmatprep.subr.mxu1 %v137_v25  ;;  %p438_p0 = scmp.ne.s32.totalorder %s301_s26, %s437_s2  ;;  %p443_p2 = scmp.lt.s32.totalorder %s437_s2, %s437_s2 }
  0x1c   :  { %372 = vmatpush3.msra.mxu0 %v39_v24  ;;  %407 = vmatpush3.msra.mxu1 %v137_v25 }
  0x1d   :  { %373 = vmatprep.subr.mxu0 %v38_v26  ;;  %408 = vmatprep.subr.mxu1 %v136_v27  ;;  %p444_p3 = por %p443_p2, %p442_p1 }
  0x1e   :  { %374 = vmatpush3.msra.mxu0 %v38_v26  ;;  %409 = vmatpush3.msra.mxu1 %v136_v27 }
  0x1f   :  { %375 = vmatprep.subr.mxu0 %v37_v28  ;;  %410 = vmatprep.subr.mxu1 %v135_v29  ;;  %p445_p4 = pnand %p444_p3, %p438_p0 }
  0x20   :  { %376 = vmatpush3.msra.mxu0 %v37_v28  ;;  %411 = vmatpush3.msra.mxu1 %v135_v29 }
  0x21   :  { %377 = vmatprep.subr.mxu0 %v36_v30  ;;  %412 = vmatprep.subr.mxu1 %v134_v31 }
  0x22   :  { %378 = vmatpush3.msra.mxu0 %v36_v30  ;;  %413 = vmatpush3.msra.mxu1 %v134_v31 }
  0x23   :  { %379 = vmatprep.subr.mxu0 %v35_v32  ;;  %414 = vmatprep.subr.mxu1 %v133_v33 }
  0x24   :  { %380 = vmatpush3.msra.mxu0 %v35_v32  ;;  %381 = vmatprep.mubr.f32.mxu0 %v608_v34 }
  0x25   :  { %415 = vmatpush3.msra.mxu1 %v133_v33  ;;  %416 = vmatprep.mubr.f32.mxu1 %v613_v35 }
  0x26   :  { %382 = vmatmul.mubr.f32.vlgmr.msra.gmra.mxu0 %v32_v36  ;;  %417 = vmatmul.mubr.f32.vlgmr.msra.gmra.mxu1 %v34_v37 }
  0x27   :  { %424 = vset.pattern.permute.xlu1 %v459_v38  ;;  %423 = vset.pattern.permute.xlu0 %v459_v38 }
  0xe6   :  { %v383_v41 = vpop.f32.mrf.mxu0  ;;  %v418_v42 = vpop.f32.mrf.mxu1 }
  0xe7   :  { %v130_v43 = vadd.f32 %v383_v41, %v311_v39  ;;  %v228_v44 = vadd.f32 %v418_v42, %v312_v40 }
  0xe8   :  { %v124_v45 = vpop.f32.mrf.mxu0  ;;  %v222_v46 = vpop.f32.mrf.mxu1 }
  0xe9   :  { %v232_v47 = vmax.f32 %v130_v43, %v228_v44  ;;  %v125_v48 = vadd.f32 %v311_v39, %v124_v45  ;;  %v223_v49 = vadd.f32 %v312_v40, %v222_v46 }
  0xeb   :  { %v234_v50 = vsub.f32 %v130_v43, %v232_v47  ;;  %v240_v51 = vsub.f32 %v228_v44, %v232_v47  ;;  %v231_v52 = vmax.f32 %v125_v48, %v223_v49 }
  0xed   :  { %v237_v53 = vmul.f32 1.442695, %v234_v50  ;;  %v243_v54 = vmul.f32 1.442695, %v240_v51  ;;  %v233_v55 = vsub.f32 %v125_v48, %v231_v52  ;;  %v239_v56 = vsub.f32 %v223_v49, %v231_v52 }
  0xef   :  { %425 = vpow2.f32 %v237_v53  ;;  %v235_v57 = vmul.f32 1.442695, %v233_v55  ;;  %v241_v58 = vmul.f32 1.442695, %v239_v56 }
  0xf0   :  { %427 = vpow2.f32 %v243_v54 }
  0xf1   :  { %429 = vpow2.f32 %v235_v57 }
  0xf2   :  { %431 = vpow2.f32 %v241_v58 }
  0xfc   :  { %v426_v59 = vpop.eup %425 }
  0xfd   :  { %v428_v60 = vpop.eup %427 }
  0xfe   :  { %v430_v61 = vpop.eup %429  ;;  %v246_v62 = vadd.f32 %v428_v60, %v426_v59 }
  0xff   :  { %v432_v63 = vpop.eup %431 }
 0x100   :  { %v245_v0 = vadd.f32 %v432_v63, %v430_v61  ;;  %433 = vrcp.f32 %v246_v62 }
 0x102   :  { %435 = vrcp.f32 %v245_v0 }
 0x10d   :  { %v434_v1 = vpop.eup %433 }
 0x10e   :  { %v264_v2 = vmul.f32 %v434_v1, %v428_v60  ;;  %v250_v3 = vmul.f32 %v434_v1, %v426_v59 }
 0x10f   :  { %v436_v4 = vpop.eup %435 }
 0x110   :  { %272 = vperm.xlu1 %424, %v264_v2   ;;  %258 = vperm.xlu0 %423, %v250_v3   ;;  %v263_v5 = vmul.f32 %v436_v4, %v432_v63  ;;  %v249_v6 = vmul.f32 %v436_v4, %v430_v61 }
 0x114   :  { %267 = vperm.xlu1 %424, %v263_v5   ;;  %253 = vperm.xlu0 %423, %v249_v6  }
 0x118   :  { %288 = vperm.xlu1 %424, %v280_v7   ;;  %283 = vperm.xlu0 %423, %v279_v8  }
 0x18b   :  { %v273_v9 = vpop.permute.xlu1 %272  ;;  %v259_v10 = vpop.permute.xlu0 %258 }
 0x18c   :  { %v276_v11 = vmul.f32 %v273_v9, %v34_v37  ;;  %v262_v12 = vmul.f32 %v259_v10, %v32_v36 }
 0x18e   :  { %v278_v17 = vadd.f32 %v276_v11, %v262_v12 }
 0x18f   :  { %v268_v13 = vpop.permute.xlu1 %267  ;;  %v254_v14 = vpop.permute.xlu0 %253 }
 0x190   :  { %v275_v15 = vmul.f32 %v268_v13, %v613_v35  ;;  %v261_v16 = vmul.f32 %v254_v14, %v608_v34 }
 0x192   :  { %v277_v18 = vadd.f32 %v275_v15, %v261_v16 }
 0x193   :  { %v289_v19 = vpop.permute.xlu1 %288  ;;  %v284_v20 = vpop.permute.xlu0 %283 }
 0x194   :  { %v292_v21 = vmul.f32 %v289_v19, %v278_v17  ;;  %v291_v22 = vmul.f32 %v284_v20, %v277_v18 }
 0x196   :  { %294 = vst [vmem:[#allocation4 + $0x8] sm:$0xff] %v292_v21  ;;  %293 = vst [vmem:[#allocation4] sm:$0xff] %v291_v22 }
 0x197   :  { %448 = shalt.err (!%p445_p4)
}
 0x198   :  { %s461_s27 = smov 128   ;;  %s462_s28 = smov 8  }
 0x199   :  { %306 = dma.vmem_to_hbm [thread:$0]  %s301_s26, 256, %s640_s7, [#allocation5], %s461_s27, %s461_s27, %s462_s28  }
 0x19a   :  { %457 = dma.done.wait [#allocation5], 256  }
 0x19b   :  { %458 = vsyncadd [#allocation5], 4294967040 }
 0x19c   :  { %310 = vsyncpa [#allocation5], 1 }

</bundles_post_ra>
